<compile_context>
chip_gen: v7x
topology: tpu7x:2x2x1
jax: 0.10.0
libtpu: 0.0.40
codegen_flags: <defaults>
</compile_context>

<pallas_src>
import functools

import jax
import jax.numpy as jnp
from jax.experimental import pallas as pl
from jax.experimental.pallas import tpu as pltpu

WINDOW = 10  # module-level `window` constant from skip-gram.py


def skipgram_lse_kernel(vc_ref, u_ref, out_ref, m_sc, s_sc):
    """Grid = (num_splits [parallel], tiles_per_split [arbitrary]).

    Each step handles one (vocab_tile, n) slab of U: scores = vc @ U_tile^T on
    the MXU (bf16 in, f32 out), folded into an online logsumexp held in f32
    VMEM scratch.  At the last tile of a split, the partial lse is written out.
    """
    k = pl.program_id(1)

    @pl.when(k == 0)
    def _():
        m_sc[...] = jnp.full_like(m_sc, -jnp.inf)
        s_sc[...] = jnp.zeros_like(s_sc)

    # (B, n) x (vocab_tile, n) contracted on the last dim of both operands:
    # feeds the MXU directly, no transpose of the U tile.
    scores = jax.lax.dot_general(
        vc_ref[...], u_ref[...],
        dimension_numbers=(((1,), (1,)), ((), ())),
        preferred_element_type=jnp.float32)               # (B, vocab_tile) f32

    # Online (streaming) logsumexp accumulation over vocab tiles.
    m_prev = m_sc[...]
    m_new = jnp.maximum(m_prev, scores.max(axis=1, keepdims=True))
    s_sc[...] = (s_sc[...] * jnp.exp(m_prev - m_new)
                 + jnp.exp(scores - m_new).sum(axis=1, keepdims=True))
    m_sc[...] = m_new

    @pl.when(k == pl.num_programs(1) - 1)
    def _():
        out_ref[0] = m_sc[...] + jnp.log(s_sc[...])        # (B, 1) partial lse


@functools.partial(jax.jit, static_argnames=("vocab_tile", "num_splits"))
def skipgram_loss(x, contexts, V_weight, U_weight, vocab_tile=2048,
                  num_splits=2):
    B = x.shape[0]
    Vocab, n = U_weight.shape

    vocab_tile = min(vocab_tile, Vocab // num_splits)
    assert vocab_tile % 16 == 0, "vocab_tile must respect bf16 sublane tiling"
    assert Vocab % (vocab_tile * num_splits) == 0
    tiles_per_split = Vocab // (vocab_tile * num_splits)

    # ---- plain-JAX glue (gathers + context term), full f32 precision ----
    vc_f32 = V_weight[x]                                   # (B, n)
    u_context = U_weight[contexts]                         # (B, C, n)
    uv = jnp.einsum("bcn,bn->b", u_context, vc_f32)        # context-dot term
    # TODO(synk): torch nan/inf debug prints from forward() are omitted.

    # ---- bf16 streaming operands for the kernel (f32 accumulation inside) --
    vc = vc_f32.astype(jnp.bfloat16)
    u_stream = U_weight.astype(jnp.bfloat16)

    # Raise the scoped-VMEM limit only when the footprint actually needs it
    # (double-buffered U tiles dominate); keep None for small/toy configs so
    # the per-generation defaults (16/32 MiB) apply untouched.
    est_bytes = (2 * vocab_tile * n * 2       # double-buffered bf16 U tile
                 + 2 * B * n * 2              # vc
                 + 4 * B * 4                  # scratch + out
                 + (1 << 20))                 # slack
    vmem_limit = None
    if est_bytes > (12 << 20):
        vmem_limit = min(2 * est_bytes, 96 << 20)

    partial = pl.pallas_call(
        skipgram_lse_kernel,
        out_shape=jax.ShapeDtypeStruct((num_splits, B, 1), jnp.float32),
        grid_spec=pltpu.PrefetchScalarGridSpec(
            num_scalar_prefetch=0,
            grid=(num_splits, tiles_per_split),
            in_specs=[
                pl.BlockSpec((B, n), lambda s, k: (0, 0)),
                pl.BlockSpec((vocab_tile, n),
                             lambda s, k: (s * tiles_per_split + k, 0)),
            ],
            out_specs=pl.BlockSpec((1, B, 1), lambda s, k: (s, 0, 0)),
            scratch_shapes=[
                pltpu.VMEM((B, 1), jnp.float32),   # running max
                pltpu.VMEM((B, 1), jnp.float32),   # running sum
            ],
        ),
        compiler_params=pltpu.CompilerParams(
            dimension_semantics=("parallel", "arbitrary"),
            vmem_limit_bytes=vmem_limit),
    )(vc, u_stream)                                         # (S, B, 1)

    # Merge per-split partial logsumexps, then the final combine.
    lse = jax.scipy.special.logsumexp(partial[:, :, 0], axis=0)   # (B,)
    return 2.0 * WINDOW * lse - uv


def reference_loss(x, contexts, V_weight, U_weight):
    vc = V_weight[x]
    u_context = U_weight[contexts]
    uv_context = jnp.einsum("bcn,bn->bc", u_context, vc)
    u_all = vc @ U_weight.T
    lse = jax.scipy.special.logsumexp(u_all, axis=1)
    return 2.0 * WINDOW * lse - uv_context.sum(axis=1)


if __name__ == "__main__":
    # Deterministic setup: vocab V=8192, embedding dim n=128 (lane-dense),
    # batch B=8, context size C=2*window=20.  Two vocab splits x two tiles
    # of 2048 rows each exercise init, streaming, and the split merge.
    Vocab, n, B, C = 8192, 128, 8, 2 * WINDOW

    key = jax.random.PRNGKey(0)
    k_v, k_u, k_x, k_c = jax.random.split(key, 4)

    initrange = 0.5 / n
    # torch: weight.data.normal_(-initrange, initrange) -> mean=-initrange, std=initrange
    V_weight = (-initrange + initrange * jax.random.normal(k_v, (Vocab, n))
                ).astype(jnp.float32)
    U_weight = (-initrange + initrange * jax.random.normal(k_u, (Vocab, n))
                ).astype(jnp.float32)

    x = jax.random.randint(k_x, (B,), 0, Vocab, dtype=jnp.int32)
    contexts = jax.random.randint(k_c, (B, C), 0, Vocab, dtype=jnp.int32)

    loss = skipgram_loss(x, contexts, V_weight, U_weight)
    jax.block_until_ready(loss)

    ref = reference_loss(x, contexts, V_weight, U_weight)
    assert loss.shape == (B,)
    # bf16 streaming of the U table bounds the lse error well below 1e-3 here.
    assert jnp.allclose(loss, ref, atol=1e-2, rtol=1e-3), (loss, ref)

    print("KERNEL_OK")
</pallas_src>

<mosaic_0001>
module attributes {stable_mosaic.version = 11 : i64} {
  func.func @skipgram_lse_kernel(%arg0: i32, %arg1: i32, %arg2: memref<8x128xbf16, #tpu.memory_space<vmem>>, %arg3: memref<2048x128xbf16, #tpu.memory_space<vmem>>, %arg4: memref<1x8x1xf32, #tpu.memory_space<vmem>>, %arg5: memref<8x1xf32, #tpu.memory_space<vmem>>, %arg6: memref<8x1xf32, #tpu.memory_space<vmem>>) attributes {dimension_semantics = [#tpu.dimension_semantics<parallel>, #tpu.dimension_semantics<arbitrary>], iteration_bounds = array<i64: 2, 2>, scalar_prefetch = 0 : i64, scratch_operands = 2 : i64, tpu.core_type = #tpu.core_type<tc>, window_params = [{pipeline_mode = #tpu.pipeline_mode<synchronous>, transform_indices = @transform_0, window_bounds = array<i64: 8, 128>}, {transform_indices = @transform_1, window_bounds = array<i64: 2048, 128>}, {transform_indices = @transform_2, window_bounds = array<i64: 1, 8, 1>}]} {
    %c0_i32 = arith.constant 0 : i32
    %0 = arith.cmpi eq, %arg1, %c0_i32 : i32
    %1 = arith.extui %0 : i1 to i32
    %c0_i32_0 = arith.constant 0 : i32
    %2 = arith.cmpi ne, %1, %c0_i32_0 : i32
    scf.if %2 {
      %cst_15 = arith.constant 0xFF800000 : f32
      %25 = vector.broadcast %cst_15 : f32 to vector<8x1xf32>
      %c0_16 = arith.constant 0 : index
      %c0_17 = arith.constant 0 : index
      %26 = vector.load %arg5[%c0_16, %c0_17] : memref<8x1xf32, #tpu.memory_space<vmem>>, vector<8x1xf32>
      tpu.vector_store %arg5[%c0_16, %c0_17], %25 {strides = array<i32>} : memref<8x1xf32, #tpu.memory_space<vmem>>, vector<8x1xf32>,
      %cst_18 = arith.constant 0.000000e+00 : f32
      %27 = vector.broadcast %cst_18 : f32 to vector<8x1xf32>
      %c0_19 = arith.constant 0 : index
      %c0_20 = arith.constant 0 : index
      %28 = vector.load %arg6[%c0_19, %c0_20] : memref<8x1xf32, #tpu.memory_space<vmem>>, vector<8x1xf32>
      tpu.vector_store %arg6[%c0_19, %c0_20], %27 {strides = array<i32>} : memref<8x1xf32, #tpu.memory_space<vmem>>, vector<8x1xf32>,
    } else {
    }
    %c0 = arith.constant 0 : index
    %c0_1 = arith.constant 0 : index
    %3 = vector.load %arg2[%c0, %c0_1] : memref<8x128xbf16, #tpu.memory_space<vmem>>, vector<8x128xbf16>
    %c0_2 = arith.constant 0 : index
    %c0_3 = arith.constant 0 : index
    %4 = vector.load %arg3[%c0_2, %c0_3] : memref<2048x128xbf16, #tpu.memory_space<vmem>>, vector<2048x128xbf16>
    %cst = arith.constant dense<0.000000e+00> : vector<8x2048xf32>
    %5 = tpu.matmul %3, %4, %cst {dimension_numbers = #tpu.dot_dimension_numbers<[1], [1], [0], [0], [0, 0, 1, 0], [], []>} : vector<8x128xbf16>, vector<2048x128xbf16>, vector<8x2048xf32> -> vector<8x2048xf32>
    %c0_4 = arith.constant 0 : index
    %c0_5 = arith.constant 0 : index
    %6 = vector.load %arg5[%c0_4, %c0_5] : memref<8x1xf32, #tpu.memory_space<vmem>>, vector<8x1xf32>
    %cst_6 = arith.constant dense<0xFF800000> : vector<8xf32>
    %7 = vector.multi_reduction <maximumf>, %5, %cst_6 [1] : vector<8x2048xf32> to vector<8xf32>
    %8 = vector.shape_cast %7 : vector<8xf32> to vector<8x1xf32>
    %9 = arith.maximumf %6, %8 : vector<8x1xf32>
    %c0_7 = arith.constant 0 : index
    %c0_8 = arith.constant 0 : index
    %10 = vector.load %arg6[%c0_7, %c0_8] : memref<8x1xf32, #tpu.memory_space<vmem>>, vector<8x1xf32>
    %11 = arith.subf %6, %9 : vector<8x1xf32>
    %12 = math.exp %11 : vector<8x1xf32>
    %13 = arith.mulf %10, %12 : vector<8x1xf32>
    %14 = vector.broadcast %9 : vector<8x1xf32> to vector<8x2048xf32>
    %15 = arith.subf %5, %14 : vector<8x2048xf32>
    %16 = math.exp %15 : vector<8x2048xf32>
    %cst_9 = arith.constant dense<0.000000e+00> : vector<8xf32>
    %17 = vector.multi_reduction <add>, %16, %cst_9 [1] : vector<8x2048xf32> to vector<8xf32>
    %18 = vector.shape_cast %17 : vector<8xf32> to vector<8x1xf32>
    %19 = arith.addf %13, %18 : vector<8x1xf32>
    %c0_10 = arith.constant 0 : index
    %c0_11 = arith.constant 0 : index
    %20 = vector.load %arg6[%c0_10, %c0_11] : memref<8x1xf32, #tpu.memory_space<vmem>>, vector<8x1xf32>
    tpu.vector_store %arg6[%c0_10, %c0_11], %19 {strides = array<i32>} : memref<8x1xf32, #tpu.memory_space<vmem>>, vector<8x1xf32>,
    %c0_12 = arith.constant 0 : index
    %c0_13 = arith.constant 0 : index
    %21 = vector.load %arg5[%c0_12, %c0_13] : memref<8x1xf32, #tpu.memory_space<vmem>>, vector<8x1xf32>
    tpu.vector_store %arg5[%c0_12, %c0_13], %9 {strides = array<i32>} : memref<8x1xf32, #tpu.memory_space<vmem>>, vector<8x1xf32>,
    %c1_i32 = arith.constant 1 : i32
    %22 = arith.cmpi eq, %arg1, %c1_i32 : i32
    %23 = arith.extui %22 : i1 to i32
    %c0_i32_14 = arith.constant 0 : i32
    %24 = arith.cmpi ne, %23, %c0_i32_14 : i32
    scf.if %24 {
      %c0_15 = arith.constant 0 : index
      %c0_16 = arith.constant 0 : index
      %25 = vector.load %arg5[%c0_15, %c0_16] : memref<8x1xf32, #tpu.memory_space<vmem>>, vector<8x1xf32>
      %c0_17 = arith.constant 0 : index
      %c0_18 = arith.constant 0 : index
      %26 = vector.load %arg6[%c0_17, %c0_18] : memref<8x1xf32, #tpu.memory_space<vmem>>, vector<8x1xf32>
      %27 = math.log %26 : vector<8x1xf32>
      %28 = arith.addf %25, %27 : vector<8x1xf32>
      %c0_19 = arith.constant 0 : index
      %c0_20 = arith.constant 0 : index
      %c0_21 = arith.constant 0 : index
      %29 = vector.load %arg4[%c0_19, %c0_20, %c0_21] : memref<1x8x1xf32, #tpu.memory_space<vmem>>, vector<1x8x1xf32>
      %30 = vector.shape_cast %29 : vector<1x8x1xf32> to vector<8x1xf32>
      %31 = vector.shape_cast %28 : vector<8x1xf32> to vector<1x8x1xf32>
      tpu.vector_store %arg4[%c0_19, %c0_20, %c0_21], %31 {strides = array<i32>} : memref<1x8x1xf32, #tpu.memory_space<vmem>>, vector<1x8x1xf32>,
    } else {
    }
    return
  }
  func.func @transform_0(%arg0: i32, %arg1: i32) -> (i32, i32) {
    %c0_i32 = arith.constant 0 : i32
    %c0_i32_0 = arith.constant 0 : i32
    %c0_i32_1 = arith.constant 0 : i32
    return %c0_i32, %c0_i32_0 : i32, i32
  }
  func.func @transform_1(%arg0: i32, %arg1: i32) -> (i32, i32) {
    %c2_i32 = arith.constant 2 : i32
    %0 = arith.muli %arg0, %c2_i32 : i32
    %1 = arith.addi %0, %arg1 : i32
    %c0_i32 = arith.constant 0 : i32
    %c0_i32_0 = arith.constant 0 : i32
    return %1, %c0_i32 : i32, i32
  }
  func.func @transform_2(%arg0: i32, %arg1: i32) -> (i32, i32, i32) {
    %c0_i32 = arith.constant 0 : i32
    %c0_i32_0 = arith.constant 0 : i32
    %c0_i32_1 = arith.constant 0 : i32
    return %arg0, %c0_i32, %c0_i32_0 : i32, i32, i32
  }
}

</mosaic_0001>

<bundles_post_ra>
// kernel: skipgram_loss.1
= control target key start
LH: loop header
LB: loop body
LE: loop exit
PB: predicated region body
PF: predicated region fallthrough
CT: control target
= control target key end

     0   :  { %s2256_s9 = smov 0   ;;  %s2258_s10 = smov 0   ;;  %s2537_s0 = inlined_call_operand.vmem [shape: bf16[8,128], index: 0, kind: input, shape index: {}]   ;;  %s2538_s1 = inlined_call_operand.vmem [shape: bf16[8192,128], index: 1, kind: input, shape index: {}]   ;;  %s2539_s2 = inlined_call_operand.vmem [shape: f32[2,8,1], index: 2, kind: output, shape index: {}]  }
   0x1   :  { %s2260_s11 = smov 0   ;;  %s2262_s12 = smov 0  }
   0x2   :  { %s2264_s13 = smov 0  }
   0x3 LB: > { %s21_s14 = sadd.s32 1, %s2228_s11  ;;  %s24_s15 = sadd.s32 1, %s2232_s12  ;;  %s2236_s13 = sphi %s2264_s13, %s12_s13   ;;  %s2232_s12 = sphi %s2262_s12, %s2543_s12   ;;  %s2228_s11 = sphi %s2260_s11, %s2542_s11   ;;  %s2224_s10 = sphi %s2258_s10, %s2541_s10   ;;  %s2220_s9 = sphi %s2256_s9, %s2540_s9  }
   0x4   : > { %p22_p0 = scmp.ge.s32.totalorder %s21_s14, 2  ;;  %p1709_p1 = scmp.ge.s32.totalorder %s2236_s13, 1 }
   0x5   : > { %p133_p2 = scmp.lt.s32.totalorder %s2236_s13, 5 }
   0x6   : > { %s2545_s14 = smov (%p22_p0, %s21_s14), 0  ;;  %s2547_s15 = smov (!%p22_p0, %s24_s15), %s2232_s12 }
   0x7   : > { %p134_p3 = pnand %p1709_p1, %p133_p2  ;;  %p26_p4 = scmp.ge.s32.totalorder %s2547_s15, 2 }
   0x8   : > { %s1710_s16 = sshll.u32 (!%p134_p3), %s2224_s10, 1  ;;  %p166_p5 = scmp.lt.s32.totalorder (!%p134_p3), %s2224_s10, 1 }
   0x9   : > { %s2549_s15 = smov (%p26_p4, %s2547_s15), 0  ;;  %137 = sbr.rel (%p134_p3) target bundleno = 990 (0x3de), region = 28 }
   0xa   : > { %s157_s17 = sadd.s32 (!%p134_p3), %s2220_s9, %s1710_s16  ;;  %p1714_p7 = scmp.ne.s32.totalorder (!%p134_p3), %s2220_s9, 0 }
   0xb   : > { %s1711_s18 = sshll.u32 (!%p134_p3), %s157_s17, 8 }
   0xc   : > { %p159_p6 = scmp.lt.s32.totalorder (!%p134_p3), %s1711_s18, 1023 }
  0x10   : > { %s2551_s10 = smov (!%p166_p5, %s2224_s10), 1  ;;  %s2553_s18 = smov (!%p159_p6, %s1711_s18), 1023 }
  0x11   : > { %s1713_s19 = sshll.u32 %s2551_s10, 3  ;;  %s1712_s20 = sshll.u32 %s2553_s18, 2  ;;  %vm175_vm0 = vcmask (!%p1714_p7), 7168   ;;  %v2238_v0 = vmov (!%p1714_p7), -inf   ;;  %v2239_v1 = vmov (!%p1714_p7), 0.0  }
  0x12   : > { %s2292_s23 = scalar_lea.vmem %s2539_s2, %s1713_s19  ;;  %s2297_s26 = scalar_lea.vmem %s2538_s1, %s1712_s20  ;;  %176 = vst.msk [vmem:[#allocation2] sm:$0xff] (!%p1714_p7), %vm175_vm0, %v2238_v0  ;;  %177 = vst.msk [vmem:[#allocation3] sm:$0xff] (!%p1714_p7), %vm175_vm0, %v2239_v1 }
  0x13   : > { %174 = sbr.rel (%p1714_p7) target bundleno = 26 (0x1a), region = 32 }
  0x1a PF: > { %v2034_v2 = vld [vmem:[%s2297_s26 + $0x40] sm:$0xff]   ;;  %v2038_v6 = vld [vmem:[%s2297_s26 + $0x48] sm:$0xff]   ;;  %v2042_v10 = vld [vmem:[%s2297_s26 + $0x50] sm:$0xff]   ;;  %vm1626_vm1 = vcmask 7168   ;;  %p1843_p8 = scmp.ne.s32.totalorder %s2220_s9, 1 }
  0x1b   : > { %v2035_v3 = vld [vmem:[%s2297_s26 + $0xc0] sm:$0xff]   ;;  %1846 = vmatprep.subr.bf16.mxu0 %v2034_v2  ;;  %v2039_v7 = vld [vmem:[%s2297_s26 + $0xc8] sm:$0xff]   ;;  %v2043_v11 = vld [vmem:[%s2297_s26 + $0xd0] sm:$0xff]  }
  0x1c   : > { %v2036_v4 = vld [vmem:[%s2297_s26] sm:$0xff]   ;;  %1864 = vmatprep.subr.bf16.mxu1 %v2035_v3  ;;  %v2040_v8 = vld [vmem:[%s2297_s26 + $0x8] sm:$0xff]   ;;  %v2044_v12 = vld [vmem:[%s2297_s26 + $0x10] sm:$0xff]  }
  0x1d   : > { %v2037_v5 = vld [vmem:[%s2297_s26 + $0x80] sm:$0xff]   ;;  %1847 = vmatpush3.bf16.xpose.msra.mxu0 %v2036_v4  ;;  %v2041_v9 = vld [vmem:[%s2297_s26 + $0x88] sm:$0xff]   ;;  %v2045_v13 = vld [vmem:[%s2297_s26 + $0x90] sm:$0xff]  }
  0x1e   : > { %1865 = vmatpush3.bf16.xpose.msra.mxu1 %v2037_v5  ;;  %1848 = vmatprep.subr.bf16.mxu0 %v2038_v6  ;;  %v2046_v14 = vld [vmem:[%s2297_s26 + $0x58] sm:$0xff]   ;;  %v2050_v18 = vld [vmem:[%s2297_s26 + $0x60] sm:$0xff]   ;;  %v2054_v23 = vld [vmem:[%s2297_s26 + $0x68] sm:$0xff]  }
  0x1f   : > { %1866 = vmatprep.subr.bf16.mxu1 %v2039_v7  ;;  %v2047_v15 = vld [vmem:[%s2297_s26 + $0xd8] sm:$0xff]   ;;  %v2051_v19 = vld [vmem:[%s2297_s26 + $0xe0] sm:$0xff]   ;;  %v2055_v24 = vld [vmem:[%s2297_s26 + $0xe8] sm:$0xff]  }
  0x20   : > { %v2048_v16 = vld [vmem:[%s2297_s26 + $0x18] sm:$0xff]   ;;  %v2052_v20 = vld [vmem:[%s2297_s26 + $0x20] sm:$0xff]   ;;  %v2056_v25 = vld [vmem:[%s2297_s26 + $0x28] sm:$0xff]  }
  0x21   : > { %v2049_v17 = vld [vmem:[%s2297_s26 + $0x98] sm:$0xff]   ;;  %v2053_v21 = vld [vmem:[%s2297_s26 + $0xa0] sm:$0xff]   ;;  %v2057_v26 = vld [vmem:[%s2297_s26 + $0xa8] sm:$0xff]  }
  0x22   : > { %v2323_v22 = vld [vmem:[%s2537_s0] sm:$0xf]  ;;  %v2058_v27 = vld [vmem:[%s2297_s26 + $0x70] sm:$0xff]   ;;  %v2062_v31 = vld [vmem:[%s2297_s26 + $0x78] sm:$0xff]  }
  0x23   : > { %1862 = vmatprep.mubr.bf16.mxu0 %v2323_v22  ;;  %1880 = vmatprep.mubr.bf16.mxu1 %v2323_v22  ;;  %v2059_v28 = vld [vmem:[%s2297_s26 + $0xf0] sm:$0xff]   ;;  %v2063_v32 = vld [vmem:[%s2297_s26 + $0xf8] sm:$0xff]   ;;  %v2066_v35 = vld [vmem:[%s2297_s26 + $0x140] sm:$0xff]  }
  0x24   : > { %v2060_v29 = vld [vmem:[%s2297_s26 + $0x30] sm:$0xff]   ;;  %v2064_v33 = vld [vmem:[%s2297_s26 + $0x38] sm:$0xff]   ;;  %v2067_v36 = vld [vmem:[%s2297_s26 + $0x1c0] sm:$0xff]  }
  0x25   : > { %1849 = vmatpush3.bf16.xpose.msra.mxu0 %v2040_v8  ;;  %v2061_v30 = vld [vmem:[%s2297_s26 + $0xb0] sm:$0xff]   ;;  %v2065_v34 = vld [vmem:[%s2297_s26 + $0xb8] sm:$0xff]   ;;  %v2068_v37 = vld [vmem:[%s2297_s26 + $0x100] sm:$0xff]  }
  0x26   : > { %1867 = vmatpush3.bf16.xpose.msra.mxu1 %v2041_v9  ;;  %1850 = vmatprep.subr.bf16.mxu0 %v2042_v10  ;;  %v2069_v38 = vld [vmem:[%s2297_s26 + $0x180] sm:$0xff]   ;;  %v2070_v39 = vld [vmem:[%s2297_s26 + $0x148] sm:$0xff]   ;;  %v2074_v43 = vld [vmem:[%s2297_s26 + $0x150] sm:$0xff]  }
  0x27   : > { %1868 = vmatprep.subr.bf16.mxu1 %v2043_v11  ;;  %v2071_v40 = vld [vmem:[%s2297_s26 + $0x1c8] sm:$0xff]   ;;  %v2075_v44 = vld [vmem:[%s2297_s26 + $0x1d0] sm:$0xff]   ;;  %v2078_v47 = vld [vmem:[%s2297_s26 + $0x158] sm:$0xff]  }
  0x28   : > { %v2072_v41 = vld [vmem:[%s2297_s26 + $0x108] sm:$0xff]   ;;  %v2076_v45 = vld [vmem:[%s2297_s26 + $0x110] sm:$0xff]   ;;  %v2079_v48 = vld [vmem:[%s2297_s26 + $0x1d8] sm:$0xff]  }
  0x29   : > { %v2073_v42 = vld [vmem:[%s2297_s26 + $0x188] sm:$0xff]   ;;  %v2077_v46 = vld [vmem:[%s2297_s26 + $0x190] sm:$0xff]   ;;  %v2080_v49 = vld [vmem:[%s2297_s26 + $0x118] sm:$0xff]  }
  0x2a   : > { %v2081_v50 = vld [vmem:[%s2297_s26 + $0x198] sm:$0xff]   ;;  %v2082_v51 = vld [vmem:[%s2297_s26 + $0x160] sm:$0xff]   ;;  %v2086_v55 = vld [vmem:[%s2297_s26 + $0x168] sm:$0xff]  }
  0x2b   : > { %v2083_v52 = vld [vmem:[%s2297_s26 + $0x1e0] sm:$0xff]   ;;  %v2087_v56 = vld [vmem:[%s2297_s26 + $0x1e8] sm:$0xff]   ;;  %v2090_v59 = vld [vmem:[%s2297_s26 + $0x170] sm:$0xff]  }
  0x2c   : > { %v2084_v53 = vld [vmem:[%s2297_s26 + $0x120] sm:$0xff]   ;;  %v2088_v57 = vld [vmem:[%s2297_s26 + $0x128] sm:$0xff]   ;;  %v2091_v60 = vld [vmem:[%s2297_s26 + $0x1f0] sm:$0xff]  }
  0x2d   : > { %1851 = vmatpush3.bf16.xpose.msra.mxu0 %v2044_v12  ;;  %v2085_v54 = vld [vmem:[%s2297_s26 + $0x1a0] sm:$0xff]   ;;  %v2089_v58 = vld [vmem:[%s2297_s26 + $0x1a8] sm:$0xff]   ;;  %v2092_v61 = vld [vmem:[%s2297_s26 + $0x130] sm:$0xff]  }
  0x2e   : > { %1869 = vmatpush3.bf16.xpose.msra.mxu1 %v2045_v13  ;;  %1852 = vmatprep.subr.bf16.mxu0 %v2046_v14  ;;  %v2093_v62 = vld [vmem:[%s2297_s26 + $0x1b0] sm:$0xff]   ;;  %v2094_v63 = vld [vmem:[%s2297_s26 + $0x178] sm:$0xff]   ;;  %v2098_v3 = vld [vmem:[%s2297_s26 + $0x240] sm:$0xff]  }
  0x2f   : > { %1870 = vmatprep.subr.bf16.mxu1 %v2047_v15  ;;  %v2095_v0 = vld [vmem:[%s2297_s26 + $0x1f8] sm:$0xff]   ;;  %v2099_v4 = vld [vmem:[%s2297_s26 + $0x2c0] sm:$0xff]   ;;  %v2102_v7 = vld [vmem:[%s2297_s26 + $0x248] sm:$0xff]  }
  0x30   : > { %v2096_v1 = vld [vmem:[%s2297_s26 + $0x138] sm:$0xff]   ;;  %v2100_v5 = vld [vmem:[%s2297_s26 + $0x200] sm:$0xff]   ;;  %v2103_v8 = vld [vmem:[%s2297_s26 + $0x2c8] sm:$0xff]  }
  0x31   : > { %v2097_v2 = vld [vmem:[%s2297_s26 + $0x1b8] sm:$0xff]   ;;  %v2101_v6 = vld [vmem:[%s2297_s26 + $0x280] sm:$0xff]   ;;  %v2104_v9 = vld [vmem:[%s2297_s26 + $0x208] sm:$0xff]  }
  0x32   : > { %v2105_v10 = vld [vmem:[%s2297_s26 + $0x288] sm:$0xff]   ;;  %v2106_v11 = vld [vmem:[%s2297_s26 + $0x250] sm:$0xff]   ;;  %v2110_v15 = vld [vmem:[%s2297_s26 + $0x258] sm:$0xff]  }
  0x33   : > { %v2107_v12 = vld [vmem:[%s2297_s26 + $0x2d0] sm:$0xff]  }
  0x34   : > { %v2108_v13 = vld [vmem:[%s2297_s26 + $0x210] sm:$0xff]  }
  0x35   : > { %1853 = vmatpush3.bf16.xpose.msra.mxu0 %v2048_v16  ;;  %v2109_v14 = vld [vmem:[%s2297_s26 + $0x290] sm:$0xff]   ;;  %v2111_v16 = vld [vmem:[%s2297_s26 + $0x2d8] sm:$0xff]  }
  0x36   : > { %1871 = vmatpush3.bf16.xpose.msra.mxu1 %v2049_v17  ;;  %1854 = vmatprep.subr.bf16.mxu0 %v2050_v18  ;;  %v2112_v17 = vld [vmem:[%s2297_s26 + $0x218] sm:$0xff]  }
  0x37   : > { %1872 = vmatprep.subr.bf16.mxu1 %v2051_v19  ;;  %v2113_v18 = vld [vmem:[%s2297_s26 + $0x298] sm:$0xff]   ;;  %v2114_v19 = vld [vmem:[%s2297_s26 + $0x260] sm:$0xff]  }
  0x3d   : > { %1855 = vmatpush3.bf16.xpose.msra.mxu0 %v2052_v20  ;;  %v2115_v20 = vld [vmem:[%s2297_s26 + $0x2e0] sm:$0xff]  }
  0x3e   : > { %1873 = vmatpush3.bf16.xpose.msra.mxu1 %v2053_v21  ;;  %1856 = vmatprep.subr.bf16.mxu0 %v2054_v23  ;;  %v2116_v21 = vld [vmem:[%s2297_s26 + $0x220] sm:$0xff]  }
  0x3f   : > { %1874 = vmatprep.subr.bf16.mxu1 %v2055_v24  ;;  %v2117_v23 = vld [vmem:[%s2297_s26 + $0x2a0] sm:$0xff]   ;;  %v2118_v24 = vld [vmem:[%s2297_s26 + $0x268] sm:$0xff]  }
  0x45   : > { %1857 = vmatpush3.bf16.xpose.msra.mxu0 %v2056_v25  ;;  %v2119_v25 = vld [vmem:[%s2297_s26 + $0x2e8] sm:$0xff]  }
  0x46   : > { %1875 = vmatpush3.bf16.xpose.msra.mxu1 %v2057_v26  ;;  %1858 = vmatprep.subr.bf16.mxu0 %v2058_v27  ;;  %v2120_v26 = vld [vmem:[%s2297_s26 + $0x228] sm:$0xff]  }
  0x47   : > { %1876 = vmatprep.subr.bf16.mxu1 %v2059_v28  ;;  %v2121_v27 = vld [vmem:[%s2297_s26 + $0x2a8] sm:$0xff]   ;;  %v2122_v28 = vld [vmem:[%s2297_s26 + $0x270] sm:$0xff]  }
  0x4d   : > { %1859 = vmatpush3.bf16.xpose.msra.mxu0 %v2060_v29  ;;  %v2123_v29 = vld [vmem:[%s2297_s26 + $0x2f0] sm:$0xff]  }
  0x4e   : > { %1877 = vmatpush3.bf16.xpose.msra.mxu1 %v2061_v30  ;;  %1860 = vmatprep.subr.bf16.mxu0 %v2062_v31  ;;  %v2124_v30 = vld [vmem:[%s2297_s26 + $0x230] sm:$0xff]  }
  0x4f   : > { %1878 = vmatprep.subr.bf16.mxu1 %v2063_v32  ;;  %v2125_v31 = vld [vmem:[%s2297_s26 + $0x2b0] sm:$0xff]   ;;  %v2126_v32 = vld [vmem:[%s2297_s26 + $0x278] sm:$0xff]  }
  0x55   : > { %1861 = vmatpush3.bf16.xpose.msra.mxu0 %v2064_v33  ;;  %v2127_v33 = vld [vmem:[%s2297_s26 + $0x2f8] sm:$0xff]  }
  0x56   : > { %1879 = vmatpush3.bf16.xpose.msra.mxu1 %v2065_v34  ;;  %1882 = vmatprep.subr.bf16.mxu0 %v2066_v35  ;;  %v2128_v34 = vld [vmem:[%s2297_s26 + $0x238] sm:$0xff]  }
  0x57   : > { %1900 = vmatprep.subr.bf16.mxu1 %v2067_v36  ;;  %v2129_v35 = vld [vmem:[%s2297_s26 + $0x2b8] sm:$0xff]   ;;  %v2130_v36 = vld [vmem:[%s2297_s26 + $0x340] sm:$0xff]  }
  0x5c   : > { %1863 = vmatmul.mubr.bf16.vlgmr.msra.gmra.mrb[0].mxu0 %v2323_v22 }
  0x5d   : > { %1881 = vmatmul.mubr.bf16.vlgmr.msra.gmra.mrb[0].mxu1 %v2323_v22  ;;  %1883 = vmatpush3.bf16.xpose.msra.mxu0 %v2068_v37  ;;  %v2131_v37 = vld [vmem:[%s2297_s26 + $0x3c0] sm:$0xff]  }
  0x5e   : > { %1901 = vmatpush3.bf16.xpose.msra.mxu1 %v2069_v38  ;;  %1884 = vmatprep.subr.bf16.mxu0 %v2070_v39  ;;  %v2132_v38 = vld [vmem:[%s2297_s26 + $0x300] sm:$0xff]  }
  0x5f   : > { %1902 = vmatprep.subr.bf16.mxu1 %v2071_v40  ;;  %1898 = vmatprep.mubr.bf16.mxu0 %v2323_v22  ;;  %v2133_v39 = vld [vmem:[%s2297_s26 + $0x380] sm:$0xff]   ;;  %v2134_v40 = vld [vmem:[%s2297_s26 + $0x348] sm:$0xff]  }
  0x60   : > { %1916 = vmatprep.mubr.bf16.mxu1 %v2323_v22 }
  0x65   : > { %1885 = vmatpush3.bf16.xpose.msra.mxu0 %v2072_v41  ;;  %v2135_v41 = vld [vmem:[%s2297_s26 + $0x3c8] sm:$0xff]  }
  0x66   : > { %1903 = vmatpush3.bf16.xpose.msra.mxu1 %v2073_v42  ;;  %1886 = vmatprep.subr.bf16.mxu0 %v2074_v43  ;;  %v2136_v42 = vld [vmem:[%s2297_s26 + $0x308] sm:$0xff]  }
  0x67   : > { %1904 = vmatprep.subr.bf16.mxu1 %v2075_v44  ;;  %v2137_v43 = vld [vmem:[%s2297_s26 + $0x388] sm:$0xff]   ;;  %v2138_v44 = vld [vmem:[%s2297_s26 + $0x350] sm:$0xff]  }
  0x6d   : > { %1887 = vmatpush3.bf16.xpose.msra.mxu0 %v2076_v45  ;;  %v2139_v45 = vld [vmem:[%s2297_s26 + $0x3d0] sm:$0xff]  }
  0x6e   : > { %1905 = vmatpush3.bf16.xpose.msra.mxu1 %v2077_v46  ;;  %1888 = vmatprep.subr.bf16.mxu0 %v2078_v47  ;;  %v2140_v46 = vld [vmem:[%s2297_s26 + $0x310] sm:$0xff]  }
  0x6f   : > { %1906 = vmatprep.subr.bf16.mxu1 %v2079_v48  ;;  %v2141_v47 = vld [vmem:[%s2297_s26 + $0x390] sm:$0xff]   ;;  %v2142_v48 = vld [vmem:[%s2297_s26 + $0x358] sm:$0xff]  }
  0x75   : > { %1889 = vmatpush3.bf16.xpose.msra.mxu0 %v2080_v49  ;;  %v2143_v49 = vld [vmem:[%s2297_s26 + $0x3d8] sm:$0xff]  }
  0x76   : > { %1907 = vmatpush3.bf16.xpose.msra.mxu1 %v2081_v50  ;;  %1890 = vmatprep.subr.bf16.mxu0 %v2082_v51  ;;  %v2144_v50 = vld [vmem:[%s2297_s26 + $0x318] sm:$0xff]  }
  0x77   : > { %1908 = vmatprep.subr.bf16.mxu1 %v2083_v52  ;;  %v2145_v51 = vld [vmem:[%s2297_s26 + $0x398] sm:$0xff]   ;;  %v2146_v52 = vld [vmem:[%s2297_s26 + $0x360] sm:$0xff]  }
  0x7d   : > { %1891 = vmatpush3.bf16.xpose.msra.mxu0 %v2084_v53  ;;  %v2147_v53 = vld [vmem:[%s2297_s26 + $0x3e0] sm:$0xff]  }
  0x7e   : > { %1909 = vmatpush3.bf16.xpose.msra.mxu1 %v2085_v54  ;;  %1892 = vmatprep.subr.bf16.mxu0 %v2086_v55  ;;  %v2148_v54 = vld [vmem:[%s2297_s26 + $0x320] sm:$0xff]  }
  0x7f   : > { %1910 = vmatprep.subr.bf16.mxu1 %v2087_v56  ;;  %v2149_v55 = vld [vmem:[%s2297_s26 + $0x3a0] sm:$0xff]   ;;  %v2150_v56 = vld [vmem:[%s2297_s26 + $0x368] sm:$0xff]  }
  0x85   : > { %1893 = vmatpush3.bf16.xpose.msra.mxu0 %v2088_v57  ;;  %v2151_v57 = vld [vmem:[%s2297_s26 + $0x3e8] sm:$0xff]  }
  0x86   : > { %1911 = vmatpush3.bf16.xpose.msra.mxu1 %v2089_v58  ;;  %1894 = vmatprep.subr.bf16.mxu0 %v2090_v59  ;;  %v2152_v58 = vld [vmem:[%s2297_s26 + $0x328] sm:$0xff]  }
  0x87   : > { %1912 = vmatprep.subr.bf16.mxu1 %v2091_v60  ;;  %v2153_v59 = vld [vmem:[%s2297_s26 + $0x3a8] sm:$0xff]   ;;  %v2154_v60 = vld [vmem:[%s2297_s26 + $0x370] sm:$0xff]  }
  0x8d   : > { %1895 = vmatpush3.bf16.xpose.msra.mxu0 %v2092_v61  ;;  %v2155_v61 = vld [vmem:[%s2297_s26 + $0x3f0] sm:$0xff]  }
  0x8e   : > { %1913 = vmatpush3.bf16.xpose.msra.mxu1 %v2093_v62  ;;  %1896 = vmatprep.subr.bf16.mxu0 %v2094_v63  ;;  %v2156_v62 = vld [vmem:[%s2297_s26 + $0x330] sm:$0xff]  }
  0x8f   : > { %1914 = vmatprep.subr.bf16.mxu1 %v2095_v0  ;;  %v2157_v63 = vld [vmem:[%s2297_s26 + $0x3b0] sm:$0xff]   ;;  %v2158_v0 = vld [vmem:[%s2297_s26 + $0x378] sm:$0xff]  }
  0x95   : > { %1897 = vmatpush3.bf16.xpose.msra.mxu0 %v2096_v1  ;;  %v2159_v1 = vld [vmem:[%s2297_s26 + $0x3f8] sm:$0xff]  }
  0x96   : > { %1915 = vmatpush3.bf16.xpose.msra.mxu1 %v2097_v2  ;;  %1918 = vmatprep.subr.bf16.mxu0 %v2098_v3  ;;  %v2160_v2 = vld [vmem:[%s2297_s26 + $0x338] sm:$0xff]  }
  0x97   : > { %1936 = vmatprep.subr.bf16.mxu1 %v2099_v4  ;;  %v2161_v3 = vld [vmem:[%s2297_s26 + $0x3b8] sm:$0xff]  }
  0x9c   : > { %1899 = vmatmul.mubr.bf16.vlgmr.msra.gmra.mrb[4].mxu0 %v2323_v22 }
  0x9d   : > { %1917 = vmatmul.mubr.bf16.vlgmr.msra.gmra.mrb[4].mxu1 %v2323_v22  ;;  %1919 = vmatpush3.bf16.xpose.msra.mxu0 %v2100_v5 }
  0x9e   : > { %1937 = vmatpush3.bf16.xpose.msra.mxu1 %v2101_v6  ;;  %1920 = vmatprep.subr.bf16.mxu0 %v2102_v7 }
  0x9f   : > { %1938 = vmatprep.subr.bf16.mxu1 %v2103_v8  ;;  %1934 = vmatprep.mubr.bf16.mxu0 %v2323_v22 }
  0xa0   : > { %1952 = vmatprep.mubr.bf16.mxu1 %v2323_v22 }
  0xa5   : > { %1921 = vmatpush3.bf16.xpose.msra.mxu0 %v2104_v9 }
  0xa6   : > { %1939 = vmatpush3.bf16.xpose.msra.mxu1 %v2105_v10  ;;  %1922 = vmatprep.subr.bf16.mxu0 %v2106_v11 }
  0xa7   : > { %1940 = vmatprep.subr.bf16.mxu1 %v2107_v12 }
  0xad   : > { %1923 = vmatpush3.bf16.xpose.msra.mxu0 %v2108_v13 }
  0xae   : > { %1941 = vmatpush3.bf16.xpose.msra.mxu1 %v2109_v14  ;;  %1924 = vmatprep.subr.bf16.mxu0 %v2110_v15 }
  0xaf   : > { %1942 = vmatprep.subr.bf16.mxu1 %v2111_v16 }
  0xb5   : > { %1925 = vmatpush3.bf16.xpose.msra.mxu0 %v2112_v17 }
  0xb6   : > { %1943 = vmatpush3.bf16.xpose.msra.mxu1 %v2113_v18  ;;  %1926 = vmatprep.subr.bf16.mxu0 %v2114_v19 }
  0xb7   : > { %1944 = vmatprep.subr.bf16.mxu1 %v2115_v20 }
  0xbd   : > { %1927 = vmatpush3.bf16.xpose.msra.mxu0 %v2116_v21 }
  0xbe   : > { %1945 = vmatpush3.bf16.xpose.msra.mxu1 %v2117_v23  ;;  %1928 = vmatprep.subr.bf16.mxu0 %v2118_v24 }
  0xbf   : > { %1946 = vmatprep.subr.bf16.mxu1 %v2119_v25 }
  0xc5   : > { %1929 = vmatpush3.bf16.xpose.msra.mxu0 %v2120_v26 }
  0xc6   : > { %1947 = vmatpush3.bf16.xpose.msra.mxu1 %v2121_v27  ;;  %1930 = vmatprep.subr.bf16.mxu0 %v2122_v28 }
  0xc7   : > { %1948 = vmatprep.subr.bf16.mxu1 %v2123_v29 }
  0xcd   : > { %1931 = vmatpush3.bf16.xpose.msra.mxu0 %v2124_v30 }
  0xce   : > { %1949 = vmatpush3.bf16.xpose.msra.mxu1 %v2125_v31  ;;  %1932 = vmatprep.subr.bf16.mxu0 %v2126_v32 }
  0xcf   : > { %1950 = vmatprep.subr.bf16.mxu1 %v2127_v33 }
  0xd5   : > { %1933 = vmatpush3.bf16.xpose.msra.mxu0 %v2128_v34 }
  0xd6   : > { %1951 = vmatpush3.bf16.xpose.msra.mxu1 %v2129_v35  ;;  %1954 = vmatprep.subr.bf16.mxu0 %v2130_v36 }
  0xd7   : > { %1972 = vmatprep.subr.bf16.mxu1 %v2131_v37 }
  0xdc   : > { %1935 = vmatmul.mubr.bf16.vlgmr.msra.gmra.mrb[8].mxu0 %v2323_v22 }
  0xdd   : > { %1953 = vmatmul.mubr.bf16.vlgmr.msra.gmra.mrb[8].mxu1 %v2323_v22  ;;  %1955 = vmatpush3.bf16.xpose.msra.mxu0 %v2132_v38 }
  0xde   : > { %1973 = vmatpush3.bf16.xpose.msra.mxu1 %v2133_v39  ;;  %1956 = vmatprep.subr.bf16.mxu0 %v2134_v40 }
  0xdf   : > { %1974 = vmatprep.subr.bf16.mxu1 %v2135_v41  ;;  %1970 = vmatprep.mubr.bf16.mxu0 %v2323_v22 }
  0xe0   : > { %1988 = vmatprep.mubr.bf16.mxu1 %v2323_v22 }
  0xe5   : > { %1957 = vmatpush3.bf16.xpose.msra.mxu0 %v2136_v42 }
  0xe6   : > { %1975 = vmatpush3.bf16.xpose.msra.mxu1 %v2137_v43  ;;  %1958 = vmatprep.subr.bf16.mxu0 %v2138_v44 }
  0xe7   : > { %1976 = vmatprep.subr.bf16.mxu1 %v2139_v45 }
  0xed   : > { %1959 = vmatpush3.bf16.xpose.msra.mxu0 %v2140_v46 }
  0xee   : > { %1977 = vmatpush3.bf16.xpose.msra.mxu1 %v2141_v47  ;;  %1960 = vmatprep.subr.bf16.mxu0 %v2142_v48 }
  0xef   : > { %1978 = vmatprep.subr.bf16.mxu1 %v2143_v49 }
  0xf5   : > { %1961 = vmatpush3.bf16.xpose.msra.mxu0 %v2144_v50 }
  0xf6   : > { %1979 = vmatpush3.bf16.xpose.msra.mxu1 %v2145_v51  ;;  %1962 = vmatprep.subr.bf16.mxu0 %v2146_v52  ;;  %v2240_v51 = vmov 0   ;;  %v2491_v52 = vld [vmem:[#allocation2] sm:$0xff] }
  0xf7   : > { %1980 = vmatprep.subr.bf16.mxu1 %v2147_v53  ;;  %2033 = vset.pattern.permute.xlu0 %v2240_v51 }
  0xfd   : > { %1963 = vmatpush3.bf16.xpose.msra.mxu0 %v2148_v54 }
  0xfe   : > { %1981 = vmatpush3.bf16.xpose.msra.mxu1 %v2149_v55  ;;  %1964 = vmatprep.subr.bf16.mxu0 %v2150_v56 }
  0xff   : > { %1982 = vmatprep.subr.bf16.mxu1 %v2151_v57 }
 0x105   : > { %1965 = vmatpush3.bf16.xpose.msra.mxu0 %v2152_v58 }
 0x106   : > { %1983 = vmatpush3.bf16.xpose.msra.mxu1 %v2153_v59  ;;  %1966 = vmatprep.subr.bf16.mxu0 %v2154_v60 }
 0x107   : > { %1984 = vmatprep.subr.bf16.mxu1 %v2155_v61 }
 0x10d   : > { %1967 = vmatpush3.bf16.xpose.msra.mxu0 %v2156_v62 }
 0x10e   : > { %1985 = vmatpush3.bf16.xpose.msra.mxu1 %v2157_v63  ;;  %1968 = vmatprep.subr.bf16.mxu0 %v2158_v0 }
 0x10f   : > { %1986 = vmatprep.subr.bf16.mxu1 %v2159_v1 }
 0x115   : > { %1969 = vmatpush3.bf16.xpose.msra.mxu0 %v2160_v2 }
 0x116   : > { %1987 = vmatpush3.bf16.xpose.msra.mxu1 %v2161_v3 }
 0x11c   : > { %1971 = vmatmul.mubr.bf16.vlgmr.msra.gmra.mrb[12].mxu0 %v2323_v22 }
 0x11d   : > { %1989 = vmatmul.mubr.bf16.vlgmr.msra.gmra.mrb[12].mxu1 %v2323_v22 }
 0x12f   : > { %v1237_v4 = vpop.f32.mrb[0].mxu0 }
 0x130   : > { %v2449_v5 = vpop.f32.mrb[0].mxu1  ;;  %v1239_v6 = vpop.f32.mrb[1].mxu0 }
 0x131   : > { %v2451_v7 = vpop.f32.mrb[1].mxu1  ;;  %v1241_v8 = vpop.f32.mrb[2].mxu0 }
 0x132   : > { %v1282_v9 = vpop.f32.mrb[2].mxu1  ;;  %v1242_v10 = vpop.f32.mrb[3].mxu0 }
 0x133   : > { %v1283_v11 = vpop.f32.mrb[3].mxu1 }
 0x16f   : > { %v2453_v12 = vpop.f32.mrb[4].mxu0 }
 0x170   : > { %v1532_v13 = vmax.f32 %v1237_v4, %v2453_v12  ;;  %v2456_v14 = vpop.f32.mrb[4].mxu1  ;;  %v2458_v15 = vpop.f32.mrb[5].mxu0 }
 0x171   : > { %v1534_v22 = vmax.f32 %v2449_v5, %v2456_v14  ;;  %v1533_v16 = vmax.f32 %v1239_v6, %v2458_v15  ;;  %v2463_v17 = vpop.f32.mrb[5].mxu1  ;;  %v1323_v18 = vpop.f32.mrb[6].mxu0 }
 0x172   : > { %v1535_v19 = vmax.f32 %v2451_v7, %v2463_v17  ;;  %v1364_v20 = vpop.f32.mrb[6].mxu1  ;;  %v1324_v21 = vpop.f32.mrb[7].mxu0 }
 0x173   : > { %v1365_v23 = vpop.f32.mrb[7].mxu1 }
 0x1af   : > { %v2467_v24 = vpop.f32.mrb[8].mxu0 }
 0x1b0   : > { %v1536_v25 = vmax.f32 %v1532_v13, %v2467_v24  ;;  %v2470_v26 = vpop.f32.mrb[8].mxu1  ;;  %v2472_v27 = vpop.f32.mrb[9].mxu0 }
 0x1b1   : > { %v1538_v28 = vmax.f32 %v1534_v22, %v2470_v26  ;;  %v1537_v29 = vmax.f32 %v1533_v16, %v2472_v27  ;;  %v2476_v30 = vpop.f32.mrb[9].mxu1  ;;  %v1405_v31 = vpop.f32.mrb[10].mxu0 }
 0x1b2   : > { %v1539_v32 = vmax.f32 %v1535_v19, %v2476_v30  ;;  %v1446_v33 = vpop.f32.mrb[10].mxu1  ;;  %v1406_v34 = vpop.f32.mrb[11].mxu0 }
 0x1b3   : > { %v1447_v35 = vpop.f32.mrb[11].mxu1 }
 0x1ef   : > { %v2479_v36 = vpop.f32.mrb[12].mxu0 }
 0x1f0   : > { %v1540_v37 = vmax.f32 %v1536_v25, %v2479_v36  ;;  %v2482_v38 = vpop.f32.mrb[12].mxu1  ;;  %v2484_v39 = vpop.f32.mrb[13].mxu0 }
 0x1f1   : > { %v1542_v40 = vmax.f32 %v1538_v28, %v2482_v38  ;;  %v1541_v41 = vmax.f32 %v1537_v29, %v2484_v39  ;;  %v2488_v42 = vpop.f32.mrb[13].mxu1  ;;  %v1487_v43 = vpop.f32.mrb[14].mxu0 }
 0x1f2   : > { %v1543_v44 = vmax.f32 %v1539_v32, %v2488_v42  ;;  %v1528_v45 = vpop.f32.mrb[14].mxu1  ;;  %v1488_v46 = vpop.f32.mrb[15].mxu0 }
 0x1f3   : > { %v1529_v47 = vpop.f32.mrb[15].mxu1  ;;  %v1544_v48 = vmax.f32 %v1540_v37, %v1541_v41 }
 0x1f4   : > { %v1545_v49 = vmax.f32 %v1542_v40, %v1543_v44 }
 0x1f6   : > { %v1546_v50 = vmax.f32 %v1544_v48, %v1545_v49 }
 0x1f8   : > { %1547 = vmax.xlane.f32.xlu0 %v1546_v50 }
 0x285   : > { %v1548_v53 = vpop.xlane.xlu0 %1547 }
 0x286   : > { %v2494_v54 = vmax.f32 %v2491_v52, %v1548_v53 }
 0x288   : > { %v1551_v55 = vsub.f32 %v2491_v52, %v2494_v54  ;;  %1628 = vst.msk [vmem:[#allocation2] sm:$0xff] %vm1626_vm1, %v2494_v54  ;;  %1557 = vperm.xlu0 %2033, %v2494_v54  }
 0x307   : > { %v1558_v56 = vpop.permute.xlu0 %1557 }
 0x308   : > { %v1560_v57 = vsub.f32 %v1237_v4, %v1558_v56  ;;  %v1561_v58 = vsub.f32 %v1239_v6, %v1558_v56  ;;  %v1562_v59 = vsub.f32 %v2449_v5, %v1558_v56  ;;  %v1563_v60 = vsub.f32 %v2451_v7, %v1558_v56 }
 0x309   : > { %v1564_v63 = vsub.f32 %v2453_v12, %v1558_v56  ;;  %v1565_v1 = vsub.f32 %v2458_v15, %v1558_v56  ;;  %v1566_v3 = vsub.f32 %v2456_v14, %v1558_v56  ;;  %v1567_v4 = vsub.f32 %v2463_v17, %v1558_v56 }
 0x30a   : > { %v1576_v61 = vmul.f32 1.442695, %v1560_v57  ;;  %v1578_v62 = vmul.f32 1.442695, %v1561_v58  ;;  %v1580_v0 = vmul.f32 1.442695, %v1562_v59  ;;  %v1568_v6 = vsub.f32 %v2467_v24, %v1558_v56 }
 0x30b   : > { %v1582_v2 = vmul.f32 1.442695, %v1563_v60  ;;  %v1584_v8 = vmul.f32 1.442695, %v1564_v63  ;;  %v1586_v5 = vmul.f32 1.442695, %v1565_v1  ;;  %v1569_v9 = vsub.f32 %v2472_v27, %v1558_v56 }
 0x30c   : > { %2162 = vpow2.f32 %v1576_v61  ;;  %v1588_v7 = vmul.f32 1.442695, %v1566_v3  ;;  %v1590_v10 = vmul.f32 1.442695, %v1567_v4  ;;  %v1570_v13 = vsub.f32 %v2470_v26, %v1558_v56  ;;  %v1550_v61 = vld [vmem:[#allocation3] sm:$0xff]  ;;  %v1633_v3 = vld [vmem:[#allocation2] sm:$0xff] (!%p1843_p8) }
 0x30d   : > { %2164 = vpow2.f32 %v1578_v62  ;;  %v1592_v14 = vmul.f32 1.442695, %v1568_v6  ;;  %v1571_v16 = vsub.f32 %v2476_v30, %v1558_v56  ;;  %v1594_v17 = vmul.f32 1.442695, %v1569_v9 }
 0x30e   : > { %2166 = vpow2.f32 %v1580_v0  ;;  %v1572_v20 = vsub.f32 %v2479_v36, %v1558_v56  ;;  %v1596_v21 = vmul.f32 1.442695, %v1570_v13  ;;  %v1573_v25 = vsub.f32 %v2484_v39, %v1558_v56 }
 0x30f   : > { %2168 = vpow2.f32 %v1582_v2  ;;  %v1598_v26 = vmul.f32 1.442695, %v1571_v16  ;;  %v1574_v29 = vsub.f32 %v2482_v38, %v1558_v56  ;;  %v1575_v33 = vsub.f32 %v2488_v42, %v1558_v56 }
 0x310   : > { %2170 = vpow2.f32 %v1584_v8  ;;  %v1600_v30 = vmul.f32 1.442695, %v1572_v20  ;;  %v1602_v34 = vmul.f32 1.442695, %v1573_v25  ;;  %v1552_v59 = vmul.f32 1.442695, %v1551_v55 }
 0x311   : > { %2172 = vpow2.f32 %v1586_v5  ;;  %v1604_v37 = vmul.f32 1.442695, %v1574_v29  ;;  %v1606_v41 = vmul.f32 1.442695, %v1575_v33 }
 0x312   : > { %2174 = vpow2.f32 %v1588_v7 }
 0x313   : > { %2176 = vpow2.f32 %v1590_v10 }
 0x314   : > { %2178 = vpow2.f32 %v1592_v14 }
 0x315   : > { %2180 = vpow2.f32 %v1594_v17 }
 0x316   : > { %v2163_v11 = vpop.eup %2162  ;;  %2182 = vpow2.f32 %v1596_v21 }
 0x317   : > { %v2165_v12 = vpop.eup %2164  ;;  %2184 = vpow2.f32 %v1598_v26 }
 0x318   : > { %v1608_v15 = vadd.f32 %v2165_v12, %v2163_v11  ;;  %v2167_v22 = vpop.eup %2166  ;;  %2186 = vpow2.f32 %v1600_v30 }
 0x319   : > { %v2169_v19 = vpop.eup %2168  ;;  %2188 = vpow2.f32 %v1602_v34 }
 0x31a   : > { %v1609_v18 = vadd.f32 %v2167_v22, %v1608_v15  ;;  %v2171_v24 = vpop.eup %2170  ;;  %2190 = vpow2.f32 %v1604_v37 }
 0x31b   : > { %v2173_v28 = vpop.eup %2172  ;;  %2192 = vpow2.f32 %v1606_v41 }
 0x31c   : > { %v1610_v23 = vadd.f32 %v2169_v19, %v1609_v18  ;;  %v2175_v32 = vpop.eup %2174  ;;  %2194 = vpow2.f32 %v1552_v59 }
 0x31d   : > { %v2177_v36 = vpop.eup %2176 }
 0x31e   : > { %v1611_v27 = vadd.f32 %v2171_v24, %v1610_v23  ;;  %v2179_v39 = vpop.eup %2178 }
 0x31f   : > { %v2181_v44 = vpop.eup %2180 }
 0x320   : > { %v1612_v31 = vadd.f32 %v2173_v28, %v1611_v27  ;;  %v2183_v45 = vpop.eup %2182 }
 0x321   : > { %v2185_v47 = vpop.eup %2184 }
 0x322   : > { %v1613_v35 = vadd.f32 %v2175_v32, %v1612_v31  ;;  %v2187_v42 = vpop.eup %2186 }
 0x323   : > { %v2189_v50 = vpop.eup %2188 }
 0x324   : > { %v1614_v40 = vadd.f32 %v2177_v36, %v1613_v35  ;;  %v2191_v53 = vpop.eup %2190 }
 0x325   : > { %v2193_v57 = vpop.eup %2192 }
 0x326   : > { %v1615_v43 = vadd.f32 %v2179_v39, %v1614_v40  ;;  %v2195_v60 = vpop.eup %2194 }
 0x327   : > { %v1554_v62 = vmul.f32 %v2195_v60, %v1550_v61 }
 0x328   : > { %v1616_v38 = vadd.f32 %v2181_v44, %v1615_v43 }
 0x32a   : > { %v1617_v46 = vadd.f32 %v2183_v45, %v1616_v38 }
 0x32c   : > { %v1618_v48 = vadd.f32 %v2185_v47, %v1617_v46 }
 0x32e   : > { %v1619_v49 = vadd.f32 %v2187_v42, %v1618_v48 }
 0x330   : > { %v1620_v51 = vadd.f32 %v2189_v50, %v1619_v49 }
 0x332   : > { %v1621_v56 = vadd.f32 %v2191_v53, %v1620_v51 }
 0x334   : > { %v1622_v58 = vadd.f32 %v2193_v57, %v1621_v56 }
 0x336   : > { %1623 = vadd.xlane.f32.xlu1 %v1622_v58 }
 0x3c0   : > { %1632 = sbr.rel (%p1843_p8) target bundleno = 990 (0x3de), region = 36 }
 0x3c3   : > { %v1624_v63 = vpop.xlane.xlu1 %1623 }
 0x3c4   : > { %v1625_v0 = vadd.f32 %v1624_v63, %v1554_v62 }
 0x3c6   : > { %1627 = vst.msk [vmem:[#allocation3] sm:$0xff] %vm1626_vm1, %v1625_v0 }
 0x3cd   : > { %v1634_v1 = vld [vmem:[#allocation3] sm:$0xff] }
 0x3ce   : > { %2196 = vlog2.f32 %v1634_v1 }
 0x3d8   : > { %v2197_v2 = vpop.eup %2196 }
 0x3d9   : > { %v1636_v8 = vmul.f32 0.6931472, %v2197_v2 }
 0x3db   : > { %v1637_v4 = vadd.f32 %v1636_v8, %v1633_v3 }
 0x3dd   : > { %1638 = vst.msk [vmem:[%s2292_s23] sm:$0xff] %vm1626_vm1, %v1637_v4 }
 0x3de PF: > { %s12_s13 = sadd.s32 1, %s2236_s13   ;;  %s2540_s9 = smov %s2228_s11 }
 0x3df   : > { %p9_p9 = scmp.ge.s32.totalorder %s12_s13, 6   ;;  %s2541_s10 = smov %s2232_s12 }
 0x3e0   : > { %s2542_s11 = smov %s2545_s14  ;;  %s2543_s12 = smov %s2549_s15 }
 0x3e1   :  { %11 = sbr.rel (!%p9_p9) target bundleno = 3 (0x3), region = 66 }

</bundles_post_ra>
